<compile_context>
chip_gen: v7x
topology: tpu7x:2x2x1
jax: 0.10.0
libtpu: 0.0.40
codegen_flags: <defaults>
</compile_context>

<pallas_src>
from functools import partial

import jax
import jax.numpy as jnp
from jax import lax
from jax.experimental import pallas as pl
from jax.experimental.pallas import tpu as pltpu


def _is_pow2(n):
    return n > 0 and (n & (n - 1)) == 0


def _pick_nb(B, row_bytes):
    """Images per block: ~<=1 MiB true bytes, power-of-two (sublane aligned,
    divides power-of-two batches exactly), and capped so large batches keep
    >= ~4 grid steps for 2-TC sharding + pipelining."""
    if B < 8:
        return B
    target = max(8, (1 << 20) // row_bytes)        # ~<= 1 MiB per block
    if B >= 32:
        target = min(target, max(8, B // 4))       # >= ~4 grid steps
    nb = min(target, B)
    nb = 1 << (nb.bit_length() - 1)                # power of two
    return max(8, nb)


def _make_cutmix_kernel(*, H, W, nb, use_roll):
    """Kernel over a block of `nb` images laid out as (nb, C*H*W)."""
    HW = H * W
    pow2 = _is_pow2(W) and _is_pow2(HW)
    w_shift = W.bit_length() - 1                   # log2(W) when pow2

    def kernel(box_ref, batch_ref, prev_ref, out_ref):
        # box_ref (SMEM, int32): [y1, y2, x1, x2]; empty box == identity.
        y1 = box_ref[0]
        y2 = box_ref[1]
        x1 = box_ref[2]
        x2 = box_ref[3]

        _, CHW = batch_ref.shape
        # (h, w) pixel coordinate of every lane of the flattened C*H*W image.
        lane = lax.broadcasted_iota(jnp.int32, (1, CHW), 1)
        if pow2:                                    # CIFAR: cheap shifts/ANDs
            pix = lane & (HW - 1)
            h = pix >> w_shift
            w = pix & (W - 1)
        else:
            pix = lane % HW
            h = pix // W
            w = pix - h * W
        inside = (h >= y1) & (h < y2) & (w >= x1) & (w < x2)   # (1, CHW)

        cur = batch_ref[...]                                   # (nb, CHW)
        prev = prev_ref[0]                                     # (1, CHW)

        # batch[:, :, y1:y2, x1:x2] = batch.roll(1, 0)[:, :, y1:y2, x1:x2]
        if use_roll:
            # Sublane rotation on the XLU (otherwise idle here); row 0 of the
            # block takes the wrap-around previous image instead.
            rolled = pltpu.roll(cur, shift=1, axis=0)
            row = lax.broadcasted_iota(jnp.int32, (nb, 1), 0)
            src = jnp.where(row == 0, prev, rolled)
            out_ref[...] = jnp.where(inside, src, cur)
        else:
            # Tiny / sublane-unaligned blocks (B < 8): two slice stores.
            out_ref[0:1, :] = jnp.where(inside, prev, cur[0:1, :])
            if nb > 1:
                out_ref[1:nb, :] = jnp.where(inside, cur[0:nb - 1, :],
                                             cur[1:nb, :])

    return kernel


def _cutmix_pallas(box, batch2, *, H, W):
    """batch2: (B, C*H*W).  Returns the cutmix-ed (B, C*H*W)."""
    B, CHW = batch2.shape
    dtype = batch2.dtype
    row_bytes = CHW * jnp.dtype(dtype).itemsize

    nb = _pick_nb(B, row_bytes)
    use_roll = nb >= 8 and nb % 8 == 0
    grid = (pl.cdiv(B, nb),)

    kernel = _make_cutmix_kernel(H=H, W=W, nb=nb, use_roll=use_roll)

    # 3-D view of the same buffer so the "previous image" block's last two
    # dims (1, CHW) equal the array dims (satisfies the (8,128) block rule).
    prev_view = batch2.reshape(B, 1, CHW)

    grid_spec = pltpu.PrefetchScalarGridSpec(
        num_scalar_prefetch=1,
        grid=grid,
        in_specs=[
            # current block of nb flattened images (lane-dense, stride-1 DMA)
            pl.BlockSpec((nb, CHW), lambda i, box_ref: (i, 0)),
            # single wrap-around "previous" image (roll by 1 across blocks),
            # read from the un-rolled batch via the index_map.
            pl.BlockSpec((1, 1, CHW),
                         lambda i, box_ref: ((i * nb + B - 1) % B, 0, 0)),
        ],
        out_specs=pl.BlockSpec((nb, CHW), lambda i, box_ref: (i, 0)),
    )

    return pl.pallas_call(
        kernel,
        out_shape=jax.ShapeDtypeStruct((B, CHW), dtype),
        grid_spec=grid_spec,
        compiler_params=pltpu.CompilerParams(
            dimension_semantics=("parallel",)),
    )(box, batch2, prev_view)


def _sample_box(key, H, W, p, alpha):
    """Device-side sampling.  Returns (apply: bool, box: int32[4] = [y1,y2,x1,x2]).

    When the p-gate says "don't apply" the box is zeroed so the lambda derived
    from it is exactly 1 (targets stay one-hot)."""
    k_p, k_lam, k_x, k_y = jax.random.split(key, 4)
    apply = jax.random.uniform(k_p) < p
    # Dirichlet([alpha, alpha])[0] == Beta(alpha, alpha)
    lambda_param = jax.random.beta(k_lam, alpha, alpha)
    r_x = jax.random.randint(k_x, (), 0, W)
    r_y = jax.random.randint(k_y, (), 0, H)
    r = 0.5 * jnp.sqrt(1.0 - lambda_param)
    r_w_half = jnp.floor(r * W).astype(jnp.int32)   # int(r*W), r*W >= 0
    r_h_half = jnp.floor(r * H).astype(jnp.int32)
    x1 = jnp.maximum(r_x - r_w_half, 0)
    y1 = jnp.maximum(r_y - r_h_half, 0)
    x2 = jnp.minimum(r_x + r_w_half, W)
    y2 = jnp.minimum(r_y + r_h_half, H)
    box = jnp.stack([y1, y2, x1, x2]).astype(jnp.int32)
    box = jnp.where(apply, box, jnp.zeros((4,), jnp.int32))
    return apply, box


@partial(jax.jit, static_argnames=("num_classes", "p", "alpha"))
def random_cutmix(batch, target, key, *, num_classes, p=0.5, alpha=1.0):
    """JAX/Pallas equivalent of RandomCutmix.forward.

    batch: float (B, C, H, W); target: int (B,) class indices.
    Returns (mixed_batch, soft_target) with soft_target (B, num_classes)."""
    if batch.ndim != 4:
        raise ValueError(f"Batch ndim should be 4. Got {batch.ndim}")
    if target.ndim != 1:
        raise ValueError(f"Target ndim should be 1. Got {target.ndim}")
    # NOTE: PyTorch requires int64 targets; JAX default int32 — same semantics.
    B, C, H, W = batch.shape

    apply, box = _sample_box(key, H, W, p, alpha)

    # Hot path: masked box copy of the (implicitly) rolled batch, lane-dense,
    # skipped entirely when the p-gate says "don't apply".
    batch2 = batch.reshape(B, C * H * W)
    mixed2 = lax.cond(apply,
                      lambda b: _cutmix_pallas(box, b, H=H, W=W),
                      lambda b: b,
                      batch2)
    mixed_batch = mixed2.reshape(B, C, H, W)

    # lambda re-derived from the clipped integer box (torchvision behavior);
    # the tiny (B, num_classes) mix is computed in f32 and cast to batch.dtype
    # to match the PyTorch reference (one_hot(...).to(batch.dtype)).
    area = ((box[1] - box[0]) * (box[3] - box[2])).astype(jnp.float32)
    lam = 1.0 - area / float(H * W)
    t32 = jax.nn.one_hot(target, num_classes, dtype=jnp.float32)
    mixed_target = (lam * t32 + (1.0 - lam) * jnp.roll(t32, 1, axis=0)
                    ).astype(batch.dtype)
    return mixed_batch, mixed_target


def _reference(batch, target, box, num_classes):
    """Pure-JAX reference built from the same deterministic box."""
    B, C, H, W = batch.shape
    y1, y2, x1, x2 = (int(v) for v in jax.device_get(box))
    ys = jnp.arange(H)[:, None]
    xs = jnp.arange(W)[None, :]
    inside = (ys >= y1) & (ys < y2) & (xs >= x1) & (xs < x2)
    ref_batch = jnp.where(inside[None, None], jnp.roll(batch, 1, axis=0), batch)
    lam = 1.0 - float((y2 - y1) * (x2 - x1)) / float(H * W)
    oh = jax.nn.one_hot(target, num_classes, dtype=batch.dtype)
    ref_target = lam * oh + (1.0 - lam) * jnp.roll(oh, 1, axis=0)
    return ref_batch, ref_target


if __name__ == "__main__":
    key = jax.random.PRNGKey(0)
    NUM_CLASSES = 100  # CIFAR-100

    # --- Test 1: tiny batch (B < 8) -> slice-store fallback path -------------
    k_data, k_tgt, k_aug = jax.random.split(jax.random.fold_in(key, 1), 3)
    B, C, H, W = 2, 4, 16, 16
    batch = jax.random.normal(k_data, (B, C, H, W), dtype=jnp.float32)
    target = jax.random.randint(k_tgt, (B,), 0, NUM_CLASSES, dtype=jnp.int32)

    mixed_batch, soft_target = random_cutmix(
        batch, target, k_aug, num_classes=NUM_CLASSES, p=1.0, alpha=1.0)
    jax.block_until_ready(mixed_batch)
    jax.block_until_ready(soft_target)
    assert mixed_batch.shape == (B, C, H, W)
    assert soft_target.shape == (B, NUM_CLASSES)

    _, box = _sample_box(k_aug, H, W, 1.0, 1.0)
    ref_b, ref_t = _reference(batch, target, box, NUM_CLASSES)
    assert bool(jnp.allclose(mixed_batch, ref_b, atol=1e-6))
    assert bool(jnp.allclose(soft_target, ref_t, atol=1e-6))

    # --- Test 2: sublane-aligned batch -> pltpu.roll path (CIFAR-like) -------
    k_data, k_tgt, k_aug = jax.random.split(jax.random.fold_in(key, 2), 3)
    B, C, H, W = 16, 3, 32, 32
    batch = jax.random.normal(k_data, (B, C, H, W), dtype=jnp.float32)
    target = jax.random.randint(k_tgt, (B,), 0, NUM_CLASSES, dtype=jnp.int32)

    mixed_batch, soft_target = random_cutmix(
        batch, target, k_aug, num_classes=NUM_CLASSES, p=1.0, alpha=1.0)
    jax.block_until_ready(mixed_batch)

    _, box = _sample_box(k_aug, H, W, 1.0, 1.0)
    ref_b, ref_t = _reference(batch, target, box, NUM_CLASSES)
    assert bool(jnp.allclose(mixed_batch, ref_b, atol=1e-6))
    assert bool(jnp.allclose(soft_target, ref_t, atol=1e-6))

    # --- Test 3: p == 0 -> lax.cond skips the kernel (identity) --------------
    mixed_batch, soft_target = random_cutmix(
        batch, target, k_aug, num_classes=NUM_CLASSES, p=0.0, alpha=1.0)
    jax.block_until_ready(mixed_batch)
    oh = jax.nn.one_hot(target, NUM_CLASSES, dtype=batch.dtype)
    assert bool(jnp.allclose(mixed_batch, batch))
    assert bool(jnp.allclose(soft_target, oh, atol=1e-6))

    print("KERNEL_OK")
</pallas_src>

<mosaic_0001>
module attributes {stable_mosaic.version = 11 : i64} {
  func.func @kernel(%arg0: i32, %arg1: memref<4xi32, #tpu.memory_space<smem>>, %arg2: memref<2x1024xf32, #tpu.memory_space<vmem>>, %arg3: memref<1x1x1024xf32, #tpu.memory_space<vmem>>, %arg4: memref<2x1024xf32, #tpu.memory_space<vmem>>) attributes {dimension_semantics = [#tpu.dimension_semantics<parallel>], iteration_bounds = array<i64: 1>, scalar_prefetch = 1 : i64, scratch_operands = 0 : i64, tpu.core_type = #tpu.core_type<tc>, window_params = [{transform_indices = @transform_0, window_bounds = array<i64: 2, 1024>}, {transform_indices = @transform_1, window_bounds = array<i64: 1, 1, 1024>}, {transform_indices = @transform_2, window_bounds = array<i64: 2, 1024>}]} {
    %c0 = arith.constant 0 : index
    %0 = memref.load %arg1[%c0] : memref<4xi32, #tpu.memory_space<smem>>
    %c1 = arith.constant 1 : index
    %1 = memref.load %arg1[%c1] : memref<4xi32, #tpu.memory_space<smem>>
    %c2 = arith.constant 2 : index
    %2 = memref.load %arg1[%c2] : memref<4xi32, #tpu.memory_space<smem>>
    %c3 = arith.constant 3 : index
    %3 = memref.load %arg1[%c3] : memref<4xi32, #tpu.memory_space<smem>>
    %4 = tpu.iota {dimensions = array<i32: 1>} : vector<1x1024xi32>
    %c255_i32 = arith.constant 255 : i32
    %5 = vector.broadcast %c255_i32 : i32 to vector<1x1024xi32>
    %6 = arith.andi %4, %5 : vector<1x1024xi32>
    %c4_i32 = arith.constant 4 : i32
    %7 = vector.broadcast %c4_i32 : i32 to vector<1x1024xi32>
    %8 = arith.shrsi %6, %7 : vector<1x1024xi32>
    %c15_i32 = arith.constant 15 : i32
    %9 = vector.broadcast %c15_i32 : i32 to vector<1x1024xi32>
    %10 = arith.andi %6, %9 : vector<1x1024xi32>
    %11 = vector.broadcast %0 : i32 to vector<1x1024xi32>
    %12 = arith.cmpi sge, %8, %11 : vector<1x1024xi32>
    %13 = vector.broadcast %1 : i32 to vector<1x1024xi32>
    %14 = arith.cmpi slt, %8, %13 : vector<1x1024xi32>
    %15 = arith.andi %12, %14 : vector<1x1024xi1>
    %16 = vector.broadcast %2 : i32 to vector<1x1024xi32>
    %17 = arith.cmpi sge, %10, %16 : vector<1x1024xi32>
    %18 = arith.andi %15, %17 : vector<1x1024xi1>
    %19 = vector.broadcast %3 : i32 to vector<1x1024xi32>
    %20 = arith.cmpi slt, %10, %19 : vector<1x1024xi32>
    %21 = arith.andi %18, %20 : vector<1x1024xi1>
    %c0_0 = arith.constant 0 : index
    %c0_1 = arith.constant 0 : index
    %22 = vector.load %arg2[%c0_0, %c0_1] : memref<2x1024xf32, #tpu.memory_space<vmem>>, vector<2x1024xf32>
    %c0_2 = arith.constant 0 : index
    %c0_3 = arith.constant 0 : index
    %c0_4 = arith.constant 0 : index
    %23 = vector.load %arg3[%c0_2, %c0_3, %c0_4] : memref<1x1x1024xf32, #tpu.memory_space<vmem>>, vector<1x1x1024xf32>
    %24 = vector.shape_cast %23 : vector<1x1x1024xf32> to vector<1x1024xf32>
    %25 = vector.extract_strided_slice %22 {offsets = [0, 0], sizes = [1, 1024], strides = [1, 1]} : vector<2x1024xf32> to vector<1x1024xf32>
    %26 = arith.select %21, %24, %25 : vector<1x1024xi1>, vector<1x1024xf32>
    %c0_5 = arith.constant 0 : index
    %c0_6 = arith.constant 0 : index
    %27 = vector.load %arg4[%c0_5, %c0_6] : memref<2x1024xf32, #tpu.memory_space<vmem>>, vector<1x1024xf32>
    tpu.vector_store %arg4[%c0_5, %c0_6], %26 {strides = array<i32>} : memref<2x1024xf32, #tpu.memory_space<vmem>>, vector<1x1024xf32>,
    %28 = vector.extract_strided_slice %22 {offsets = [0, 0], sizes = [1, 1024], strides = [1, 1]} : vector<2x1024xf32> to vector<1x1024xf32>
    %29 = vector.extract_strided_slice %22 {offsets = [1, 0], sizes = [1, 1024], strides = [1, 1]} : vector<2x1024xf32> to vector<1x1024xf32>
    %30 = arith.select %21, %28, %29 : vector<1x1024xi1>, vector<1x1024xf32>
    %c1_7 = arith.constant 1 : index
    %c0_8 = arith.constant 0 : index
    %31 = vector.load %arg4[%c1_7, %c0_8] : memref<2x1024xf32, #tpu.memory_space<vmem>>, vector<1x1024xf32>
    tpu.vector_store %arg4[%c1_7, %c0_8], %30 {strides = array<i32>} : memref<2x1024xf32, #tpu.memory_space<vmem>>, vector<1x1024xf32>,
    return
  }
  func.func @transform_0(%arg0: i32, %arg1: memref<4xi32, #tpu.memory_space<smem>>) -> (i32, i32) {
    %c0_i32 = arith.constant 0 : i32
    %c0_i32_0 = arith.constant 0 : i32
    return %arg0, %c0_i32 : i32, i32
  }
  func.func @transform_1(%arg0: i32, %arg1: memref<4xi32, #tpu.memory_space<smem>>) -> (i32, i32, i32) {
    %c2_i32 = arith.constant 2 : i32
    %0 = arith.muli %arg0, %c2_i32 : i32
    %c2_i32_0 = arith.constant 2 : i32
    %1 = arith.addi %0, %c2_i32_0 : i32
    %c1_i32 = arith.constant 1 : i32
    %2 = arith.subi %1, %c1_i32 : i32
    %c2_i32_1 = arith.constant 2 : i32
    %c0_i32 = arith.constant 0 : i32
    %3 = arith.cmpi eq, %c2_i32_1, %c0_i32 : i32
    %c1_i32_2 = arith.constant 1 : i32
    %4 = arith.select %3, %c1_i32_2, %c2_i32_1 : i32
    %5 = arith.remsi %2, %4 : i32
    %c0_i32_3 = arith.constant 0 : i32
    %6 = arith.cmpi ne, %5, %c0_i32_3 : i32
    %c0_i32_4 = arith.constant 0 : i32
    %7 = arith.cmpi slt, %5, %c0_i32_4 : i32
    %c0_i32_5 = arith.constant 0 : i32
    %8 = arith.cmpi slt, %4, %c0_i32_5 : i32
    %9 = arith.xori %7, %8 : i1
    %10 = arith.andi %9, %6 : i1
    %11 = arith.addi %5, %4 : i32
    %12 = arith.select %10, %11, %5 : i32
    %c0_i32_6 = arith.constant 0 : i32
    %c0_i32_7 = arith.constant 0 : i32
    %c0_i32_8 = arith.constant 0 : i32
    return %12, %c0_i32_6, %c0_i32_7 : i32, i32, i32
  }
  func.func @transform_2(%arg0: i32, %arg1: memref<4xi32, #tpu.memory_space<smem>>) -> (i32, i32) {
    %c0_i32 = arith.constant 0 : i32
    %c0_i32_0 = arith.constant 0 : i32
    return %arg0, %c0_i32 : i32, i32
  }
}

</mosaic_0001>

<bundles_post_ra>
// kernel: branch_1_fun.1
= control target key start
LH: loop header
LB: loop body
LE: loop exit
PB: predicated region body
PF: predicated region fallthrough
CT: control target
= control target key end

     0   :  { %s781_s0 = inlined_call_operand.vmem [shape: s32[4], index: 0, kind: input, shape index: {}]   ;;  %s782_s1 = inlined_call_operand.vmem [shape: f32[2,1024], index: 1, kind: input, shape index: {}]   ;;  %s783_s2 = inlined_call_operand.vmem [shape: f32[2,1,1024], index: 2, kind: input, shape index: {}]   ;;  %s784_s3 = inlined_call_operand.vmem [shape: f32[2,1024], index: 3, kind: output, shape index: {}]  }
   0x1   :  { %s8_s14 = sshll.u32 %s781_s0, 4  ;;  %s9_s14 = int_to_ptr.vmem [resolvable:$true] %s8_s14 }
   0x2   :  { %s475_s15 = scalar_lea.vmem %s9_s14, 16  ;;  %p480_p1 = scmp.lt.s32.totalorder %s9_s14, %s9_s14 }
   0x3   :  { %p476_p0 = scmp.ne.s32.totalorder %s9_s14, %s475_s15  ;;  %p481_p2 = scmp.lt.s32.totalorder %s475_s15, %s475_s15 }
   0x5   :  { %p482_p3 = por %p481_p2, %p480_p1 }
   0x7   :  { %p483_p4 = pnand %p482_p3, %p476_p0 }
   0x9   :  { %486 = shalt.err (!%p483_p4)  }
   0xa   :  { %s489_s16 = smov [#allocation3]  }
   0xb   :  { %11 = dma.vmem_to_smem %s9_s14, 16, %s489_s16, [#allocation2] }
   0xc   :  { %487 = dma.done.wait [#allocation2], 16 }
   0xd   :  { %488 = vsyncadd [#allocation2], 4294967280 }
   0xe   :  { %13 = sfence }
   0xf   :  { %v104_v0 = vlaneseq  ;;  %s100_s17 = sld [smem:[#allocation3]]  ;;  %s468_s0 = sld [smem:[#allocation3 + $0x1]]  ;;  %v791_v38 = vmov 0  ;;  %v490_v46 = vmov 1966171168   ;;  %v627_v54 = vld [vmem:[%s783_s2 + $0x8] sm:$0xff] }
  0x10   :  { %s514_s18 = sld [smem:[#allocation3 + $0x2]]  ;;  %s518_s19 = sld [smem:[#allocation3 + $0x3]]  ;;  %v304_v47 = vunpack.c.l.s4 %v490_v46  ;;  %v197_v57 = vld [vmem:[%s782_s1] sm:$0xff] }
  0x11   :  { %v105_v1 = vand.u32 127, %v104_v0  ;;  %v516_v23 = vshrl.u32 %v104_v0, 7 }
  0x13   :  { %v106_v2 = vadd.s32 128, %v105_v1  ;;  %v107_v3 = vadd.s32 256, %v105_v1  ;;  %v108_v4 = vadd.s32 384, %v105_v1  ;;  %v109_v5 = vadd.s32 512, %v105_v1 }
  0x14   :  { %v113_v6 = vand.u32 255, %v105_v1  ;;  %v110_v7 = vadd.s32 640, %v105_v1  ;;  %v111_v8 = vadd.s32 768, %v105_v1  ;;  %v112_v11 = vadd.s32 896, %v105_v1 }
  0x15   :  { %v114_v9 = vand.u32 255, %v106_v2  ;;  %v115_v10 = vand.u32 255, %v107_v3  ;;  %v116_v12 = vand.u32 255, %v108_v4  ;;  %v117_v13 = vand.u32 255, %v109_v5  ;;  %v198_v4 = vld [vmem:[%s782_s1 + $0x8] sm:$0xff] }
  0x16   :  { %v121_v14 = vshra.s32 %v113_v6, 4  ;;  %v118_v15 = vand.u32 255, %v110_v7  ;;  %v119_v16 = vand.u32 255, %v111_v8  ;;  %v137_v19 = vstv %s100_s17 }
  0x17   :  { %v122_v17 = vshra.s32 %v114_v9, 4  ;;  %v123_v18 = vshra.s32 %v115_v10, 4  ;;  %v120_v20 = vand.u32 255, %v112_v11  ;;  %v124_v21 = vshra.s32 %v116_v12, 4 }
  0x18   :  { %v125_v22 = vshra.s32 %v117_v13, 4  ;;  %vm138_vm0 = vcmp.ge.s32.totalorder %v121_v14, %v137_v19  ;;  %v126_v24 = vshra.s32 %v118_v15, 4  ;;  %v127_v25 = vshra.s32 %v119_v16, 4 }
  0x19   :  { %vm139_vm1 = vcmp.ge.s32.totalorder %v122_v17, %v137_v19  ;;  %v146_v26 = vstv %s468_s0  ;;  %vm140_vm2 = vcmp.ge.s32.totalorder %v123_v18, %v137_v19  ;;  %v128_v27 = vshra.s32 %v120_v20, 4 }
  0x1a   :  { %vm147_vm3 = vcmp.lt.s32.totalorder %v121_v14, %v146_v26  ;;  %vm148_vm4 = vcmp.lt.s32.totalorder %v122_v17, %v146_v26  ;;  %vm149_vm5 = vcmp.lt.s32.totalorder %v123_v18, %v146_v26  ;;  %v520_v28 = vand.u32 15, %v113_v6 }
  0x1b   :  { %vm141_vm6 = vcmp.ge.s32.totalorder %v124_v21, %v137_v19  ;;  %vm150_vm7 = vcmp.lt.s32.totalorder %v124_v21, %v146_v26  ;;  %vm523_vm8 = vmand %vm138_vm0, %vm147_vm3  ;;  %v527_v30 = vand.u32 15, %v114_v9  ;;  %v529_v31 = vand.u32 15, %v115_v10 }
  0x1c   :  { %vm142_vm9 = vcmp.ge.s32.totalorder %v125_v22, %v137_v19  ;;  %vm151_vm10 = vcmp.lt.s32.totalorder %v125_v22, %v146_v26  ;;  %vm532_vm11 = vmand %vm139_vm1, %vm148_vm4  ;;  %v536_v33 = vand.u32 15, %v116_v12  ;;  %vm143_vm12 = vcmp.ge.s32.totalorder %v126_v24, %v137_v19 }
  0x1d   :  { %vm152_vm13 = vcmp.lt.s32.totalorder %v126_v24, %v146_v26  ;;  %vm539_vm14 = vmand %vm140_vm2, %vm149_vm5  ;;  %v544_v35 = vstv %s514_s18  ;;  %v546_v36 = vand.u32 15, %v117_v13  ;;  %v548_v37 = vand.u32 15, %v118_v15 }
  0x1e   :  { %vm144_vm15 = vcmp.ge.s32.totalorder %v127_v25, %v137_v19  ;;  %vm153_vm0 = vcmp.lt.s32.totalorder %v127_v25, %v146_v26  ;;  %vm552_vm1 = vmand %vm141_vm6, %vm150_vm7  ;;  %v556_v39 = vand.u32 15, %v119_v16  ;;  %vm145_vm2 = vcmp.ge.s32.totalorder %v128_v27, %v137_v19 }
  0x1f   :  { %v792_v38 = vsel %vm552_vm1, 4294967295, %v791_v38  ;;  %vm154_vm3 = vcmp.lt.s32.totalorder %v128_v27, %v146_v26  ;;  %vm560_vm4 = vmand %vm142_vm9, %vm151_vm10  ;;  %v564_v41 = vand.u32 15, %v120_v20  ;;  %vm164_vm6 = vcmp.ge.s32.totalorder %v520_v28, %v544_v35 }
  0x20   :  { %vm566_vm5 = vmand %vm143_vm12, %vm152_vm13  ;;  %vm165_vm1 = vcmp.ge.s32.totalorder %v527_v30, %v544_v35  ;;  %v579_v44 = vstv %s518_s19  ;;  %v203_v45 = vsub.s32 0, %v516_v23  ;;  %vm166_vm10 = vcmp.ge.s32.totalorder %v529_v31, %v544_v35 }
  0x21   :  { %vm572_vm7 = vmand %vm144_vm15, %vm153_vm0  ;;  %vm167_vm12 = vcmp.ge.s32.totalorder %v536_v33, %v544_v35  ;;  %vm168_vm13 = vcmp.ge.s32.totalorder %v546_v36, %v544_v35  ;;  %vm169_vm15 = vcmp.ge.s32.totalorder %v548_v37, %v544_v35  ;;  %v603_v50 = vsub.s32 1, %v516_v23 }
  0x22   :  { %vm582_vm9 = vmand %vm145_vm2, %vm154_vm3  ;;  %v211_v51 = vsub.s32 2, %v516_v23  ;;  %v607_v52 = vsub.s32 3, %v516_v23  ;;  %vm171_vm3 = vcmp.ge.s32.totalorder %v564_v41, %v544_v35  ;;  %v219_v55 = vsub.s32 4, %v516_v23 }
  0x23   :  { %vm598_vm2 = vmand %vm523_vm8, %vm164_vm6  ;;  %v647_v58 = vsub.s32 5, %v516_v23  ;;  %v650_v59 = vsub.s32 6, %v516_v23  ;;  %vm185_vm0 = vcmp.lt.s32.totalorder %v546_v36, %v579_v44  ;;  %vm187_vm6 = vcmp.lt.s32.totalorder %v556_v39, %v579_v44 }
  0x24   :  { %vm616_vm8 = vmand %vm532_vm11, %vm165_vm1  ;;  %vm186_vm1 = vcmp.lt.s32.totalorder %v548_v37, %v579_v44  ;;  %v668_v61 = vsub.s32 7, %v516_v23  ;;  %v204_v63 = vrot.slane %v627_v54, %v203_v45  ;;  %v208_v0 = vrot.slane %v627_v54, %v603_v50 }
  0x25   :  { %vm635_vm11 = vmand %vm539_vm14, %vm166_vm10  ;;  %vm807_vm14 = vnez %v792_v38  ;;  %v212_v1 = vrot.slane %v627_v54, %v211_v51  ;;  %v216_v2 = vrot.slane %v627_v54, %v607_v52  ;;  %v220_v5 = vrot.slane %v627_v54, %v219_v55 }
  0x26   :  { %vm657_vm10 = vmand %vm807_vm14, %vm167_vm12  ;;  %v246_v6 = vrot.slane %v197_v57, %v203_v45  ;;  %v305_v7 = vunpack.c.0.s8 %v304_v47  ;;  %v353_v8 = vrot.slane %v197_v57, %v603_v50  ;;  %v224_v10 = vrot.slane %v627_v54, %v647_v58 }
  0x27   :  { %vm675_vm12 = vmand %vm560_vm4, %vm168_vm13  ;;  %vm814_vm13 = vcmp.ge.s32.totalorder %v556_v39, %v544_v35  ;;  %v228_v11 = vrot.slane %v627_v54, %v650_v59  ;;  %v250_v12 = vrot.slane %v197_v57, %v211_v51  ;;  %v357_v13 = vrot.slane %v197_v57, %v607_v52 }
  0x28   :  { %vm692_vm4 = vmand %vm566_vm5, %vm169_vm15  ;;  %v232_v15 = vrot.slane %v627_v54, %v668_v61  ;;  %v254_v16 = vrot.slane %v197_v57, %v219_v55  ;;  %v258_v17 = vrot.slane %v197_v57, %v650_v59  ;;  %v361_v18 = vrot.slane %v197_v57, %v647_v58 }
  0x29   :  { %vm706_vm14 = vmand %vm572_vm7, %vm814_vm13  ;;  %vm819_vm7 = vcmp.lt.s32.totalorder %v520_v28, %v579_v44  ;;  %v262_v19 = vrot.slane %v198_v4, %v203_v45  ;;  %v266_v20 = vrot.slane %v198_v4, %v211_v51  ;;  %v270_v21 = vrot.slane %v198_v4, %v219_v55 }
  0x2a   :  { %vm720_vm5 = vmand %vm582_vm9, %vm171_vm3  ;;  %v365_v22 = vrot.slane %v197_v57, %v668_v61  ;;  %vm820_vm9 = vcmp.lt.s32.totalorder %v527_v30, %v579_v44  ;;  %v308_v25 = vsub.s32 %v305_v7, %v516_v23  ;;  %v369_v26 = vrot.slane %v198_v4, %v603_v50 }
  0x2b   :  { %vm189_vm15 = vmand %vm598_vm2, %vm819_vm7  ;;  %vm821_vm2 = vcmp.lt.s32.totalorder %v529_v31, %v579_v44  ;;  %v373_v29 = vrot.slane %v198_v4, %v607_v52  ;;  %v377_v30 = vrot.slane %v198_v4, %v647_v58  ;;  %v274_v31 = vrot.slane %v198_v4, %v650_v59 }
  0x2c   :  { %vm190_vm3 = vmand %vm616_vm8, %vm820_vm9  ;;  %v283_v24 = vsel %vm189_vm15, %v204_v63, %v246_v6  ;;  %v390_v27 = vsel %vm189_vm15, %v246_v6, %v353_v8  ;;  %vm822_vm8 = vcmp.lt.s32.totalorder %v536_v33, %v579_v44  ;;  %v381_v42 = vrot.slane %v198_v4, %v668_v61 }
  0x2d   :  { %vm191_vm13 = vmand %vm635_vm11, %vm821_vm2  ;;  %v284_v28 = vsel %vm190_vm3, %v208_v0, %v250_v12  ;;  %v391_v32 = vsel %vm190_vm3, %v250_v12, %v357_v13 }
  0x2e   :  { %vm192_vm7 = vmand %vm657_vm10, %vm822_vm8  ;;  %v285_v23 = vsel %vm191_vm13, %v212_v1, %v254_v16  ;;  %v299_v34 = vcombine.low %v283_v24, %v284_v28  ;;  %v392_v35 = vsel %vm191_vm13, %v254_v16, %v361_v18  ;;  %v406_v38 = vcombine.low %v390_v27, %v391_v32 }
  0x2f   :  { %vm193_vm11 = vmand %vm675_vm12, %vm185_vm0  ;;  %v286_v40 = vsel %vm192_vm7, %v216_v2, %v258_v17  ;;  %v393_v43 = vsel %vm192_vm7, %v258_v17, %v365_v22  ;;  %vm823_vm12 = vcmp.lt.s32.totalorder %v564_v41, %v579_v44 }
  0x30   :  { %vm194_vm10 = vmand %vm692_vm4, %vm186_vm1  ;;  %v287_v33 = vsel %vm193_vm11, %v220_v5, %v262_v19  ;;  %v300_v45 = vcombine.low %v285_v23, %v286_v40  ;;  %v309_v46 = vrot.slane %v299_v34, %v308_v25  ;;  %v394_v47 = vsel %vm193_vm11, %v262_v19, %v369_v26 }
  0x31   :  { %vm195_vm0 = vmand %vm706_vm14, %vm187_vm6  ;;  %v288_v36 = vsel %vm194_vm10, %v224_v10, %v266_v20  ;;  %v395_v48 = vsel %vm194_vm10, %v266_v20, %v373_v29  ;;  %v407_v49 = vcombine.low %v392_v35, %v393_v43  ;;  %v416_v50 = vrot.slane %v406_v38, %v308_v25 }
  0x32   :  { %vm196_vm1 = vmand %vm720_vm5, %vm823_vm12  ;;  %v289_v37 = vsel %vm195_vm0, %v228_v11, %v270_v21  ;;  %v301_v51 = vcombine.low %v287_v33, %v288_v36  ;;  %v316_v52 = vrot.slane %v300_v45, %v308_v25  ;;  %v396_v53 = vsel %vm195_vm0, %v270_v21, %v377_v30 }
  0x33   :  { %v290_v54 = vsel %vm196_vm1, %v232_v15, %v274_v31  ;;  %v397_v55 = vsel %vm196_vm1, %v274_v31, %v381_v42  ;;  %v408_v39 = vcombine.low %v394_v47, %v395_v48  ;;  %v423_v56 = vrot.slane %v407_v49, %v308_v25 }
  0x34   :  { %v302_v57 = vcombine.low %v289_v37, %v290_v54  ;;  %v323_v58 = vrot.slane %v301_v51, %v308_v25  ;;  %v331_v59 = vcombine.low %v309_v46, %v316_v52  ;;  %v409_v60 = vcombine.low %v396_v53, %v397_v55 }
  0x35   :  { %v430_v61 = vrot.slane %v408_v39, %v308_v25  ;;  %v438_v62 = vcombine.low %v416_v50, %v423_v56 }
  0x36   :  { %v330_v63 = vrot.slane %v302_v57, %v308_v25  ;;  %v437_v0 = vrot.slane %v409_v60, %v308_v25  ;;  %v339_v44 = vrot.slane %v331_v59, %v308_v25 }
  0x37   :  { %v446_v2 = vrot.slane %v438_v62, %v308_v25 }
  0x38   :  { %v332_v41 = vcombine.low %v323_v58, %v330_v63  ;;  %v439_v1 = vcombine.low %v430_v61, %v437_v0 }
  0x3a   :  { %v346_v3 = vrot.slane %v332_v41, %v308_v25  ;;  %v453_v4 = vrot.slane %v439_v1, %v308_v25 }
  0x3c   :  { %v347_v5 = vcombine.low %v339_v44, %v346_v3  ;;  %v454_v6 = vcombine.low %v446_v2, %v453_v4 }
  0x3e   :  { %349 = vst [vmem:[%s784_s3] ss:$2 sm:$0xff] %v347_v5  ;;  %472 = vst [vmem:[%s784_s3 + $0x1] ss:$2 sm:$0xff] %v454_v6 }

</bundles_post_ra>
